<compile_context>
chip_gen: v7x
topology: tpu7x:2x2x1
jax: 0.10.0
libtpu: 0.0.40
codegen_flags: <defaults>
</compile_context>

<pallas_src>
import jax
import jax.numpy as jnp
from jax.experimental import pallas as pl
from jax.experimental.pallas import tpu as pltpu

# ~4 MiB per streamed x tile: amortizes the ~0.35 us/grid-step pipeline overhead at
# HBM roofline (important on v7x's 3.2 TB/s) while keeping the ~6 in-flight buffers
# (2x x-in + 2x x-out + 2x pe) around ~24 MiB.
_TARGET_TILE_BYTES = 4 << 20
# Explicit scoped-VMEM budget: below v7x's 64 MiB physical per-TC VMEM, far below
# v5e/v6e's 128 MiB, and comfortably above the in-flight buffer footprint + internal scratch.
_VMEM_LIMIT_BYTES = 48 << 20


def create_positional_encodings(seq_len: int, model_dimension: int,
                                scalar: float = 10000.0, dtype=jnp.float32):
    """Deterministic parameter setup (mirrors the PyTorch __init__).

    Stores pe directly in the activation dtype so forward() never re-casts it.
    """
    pos = jnp.arange(seq_len, dtype=jnp.float32)[:, None]               # (S, 1)
    i = jnp.arange(model_dimension // 2, dtype=jnp.float32)[None, :]     # (1, D/2)
    denom = jnp.power(scalar, 2.0 * i / model_dimension)                 # (1, D/2)
    angles = pos / denom                                                 # (S, D/2)
    pe = jnp.zeros((seq_len, model_dimension), dtype=jnp.float32)
    pe = pe.at[:, 0::2].set(jnp.sin(angles))
    pe = pe.at[:, 1::2].set(jnp.cos(angles))
    return pe.astype(dtype)


def _add_pe_kernel(x_ref, pe_ref, o_ref):
    # Lane-aligned elementwise add. pe_ref either matches x_ref exactly (seq-tiled
    # paths) or is (1, TF) broadcasting over batch rows (flattened path).
    o_ref[...] = x_ref[...] + pe_ref[...]


def _round_down(x: int, m: int) -> int:
    return max(m, (x // m) * m)


def _sublane_multiple(dtype) -> int:
    # Packed sub-32-bit dtypes stack along sublanes: bf16 -> 16, int8/fp8 -> 32.
    itemsize = jnp.dtype(dtype).itemsize
    return {4: 8, 2: 16, 1: 32}.get(itemsize, 8)


def _seq_tiled_forward(batch: jax.Array, pe: jax.Array) -> jax.Array:
    """Tile the sequence axis; last block dim is full D (lane-dense when D%128==0)."""
    B, S, D = batch.shape
    itemsize = jnp.dtype(batch.dtype).itemsize
    sub = _sublane_multiple(batch.dtype)

    max_ts = _round_down(_TARGET_TILE_BYTES // (D * itemsize), sub)
    ts = S if S <= max_ts else max_ts                 # multiple of `sub`, or full S
    # Avoid a degenerate (1,1) grid that would idle one of v7x's two TensorCores.
    if B == 1 and pl.cdiv(S, ts) == 1 and S > sub:
        ts = _round_down(pl.cdiv(S, 2), sub)

    grid = (pl.cdiv(S, ts), B)                        # seq OUTER, batch INNER
    return pl.pallas_call(
        _add_pe_kernel,
        out_shape=jax.ShapeDtypeStruct((B, S, D), batch.dtype),
        grid_spec=pltpu.PrefetchScalarGridSpec(
            num_scalar_prefetch=0,
            grid=grid,
            in_specs=[
                # squeeze the size-1 batch dim -> kernel sees a plain (ts, D) tile
                pl.BlockSpec((pl.Squeezed(), ts, D), lambda s, b: (b, s, 0)),
                # pe block index constant across the inner batch loop -> stays resident
                pl.BlockSpec((ts, D), lambda s, b: (s, 0)),
            ],
            out_specs=pl.BlockSpec((pl.Squeezed(), ts, D), lambda s, b: (b, s, 0)),
        ),
        compiler_params=pltpu.CompilerParams(
            dimension_semantics=("parallel", "parallel"),
            vmem_limit_bytes=_VMEM_LIMIT_BYTES,
        ),
    )(batch, pe)


def _flat_forward(batch: jax.Array, pe: jax.Array) -> jax.Array:
    """Flatten (S, D) -> F (multiple of 128) so the output last dim is lane-dense."""
    B, S, D = batch.shape
    F = S * D
    itemsize = jnp.dtype(batch.dtype).itemsize
    sub = _sublane_multiple(batch.dtype)

    x2 = batch.reshape(B, F)
    pe2 = pe.reshape(1, F)

    tb = B if B <= sub else sub                       # multiple of sublane count, or full B
    max_tf = _round_down(_TARGET_TILE_BYTES // (tb * itemsize), 128)
    tf = F if F <= max_tf else max_tf                 # multiple of 128, or full F
    # Avoid a degenerate (1,1) grid at B == 1 (v7x dual-TensorCore).
    if B == 1 and pl.cdiv(F, tf) == 1 and F >= 256:
        tf = _round_down(pl.cdiv(F, 2), 128)

    grid = (pl.cdiv(F, tf), pl.cdiv(B, tb))           # flat-axis OUTER -> pe tile resident
    out2 = pl.pallas_call(
        _add_pe_kernel,
        out_shape=jax.ShapeDtypeStruct((B, F), batch.dtype),
        grid_spec=pltpu.PrefetchScalarGridSpec(
            num_scalar_prefetch=0,
            grid=grid,
            in_specs=[
                pl.BlockSpec((tb, tf), lambda f, b: (b, f)),
                pl.BlockSpec((1, tf), lambda f, b: (0, f)),  # broadcast row, one DMA per f tile
            ],
            out_specs=pl.BlockSpec((tb, tf), lambda f, b: (b, f)),
        ),
        compiler_params=pltpu.CompilerParams(
            dimension_semantics=("parallel", "parallel"),
            vmem_limit_bytes=_VMEM_LIMIT_BYTES,
        ),
    )(x2, pe2)
    return out2.reshape(B, S, D)


def positional_encoding_forward(batch: jax.Array, pe: jax.Array) -> jax.Array:
    """batch: (B, S, D), pe: (S, D) -> (B, S, D) == batch + pe (broadcast over B)."""
    B, S, D = batch.shape
    assert pe.shape == (S, D), f"pe shape {pe.shape} must match (S, D)=({S},{D})"
    if pe.dtype != batch.dtype:
        # Static (trace-time) check: free when pe was built with the right dtype at init.
        pe = pe.astype(batch.dtype)

    if D % 128 == 0:
        # Lane-dense model dim: stream seq tiles directly.
        return _seq_tiled_forward(batch, pe)
    if (S * D) % 128 == 0:
        # Small / unaligned D but lane-dense when flattened: avoids masked vst.msk.
        return _flat_forward(batch, pe)
    # Fully unaligned D: bounded seq tiles with full-D last dim (masked store tail is
    # far cheaper than an unbounded (B, S*D) tile blowing VMEM on long sequences).
    return _seq_tiled_forward(batch, pe)


if __name__ == "__main__":
    key = jax.random.PRNGKey(0)

    # Demo shapes implied by the module: model_dimension=32, max_seq_len=8, batch=2
    # (exercises the flattened lane-dense path: F = 8*32 = 256).
    B0, S0, D0 = 2, 8, 32
    x0 = jax.random.normal(key, (B0, S0, D0), dtype=jnp.float32)
    pe0 = create_positional_encodings(S0, D0, dtype=x0.dtype)
    out0 = jax.block_until_ready(positional_encoding_forward(x0, pe0))
    ref0 = x0 + pe0[None, :, :]
    assert out0.shape == x0.shape
    assert jnp.allclose(out0, ref0, atol=1e-6), "mismatch vs reference (flat path)"

    # Lane-dense seq-tiled path (D multiple of 128), still small.
    B1, S1, D1 = 2, 16, 128
    x1 = jax.random.normal(jax.random.PRNGKey(0), (B1, S1, D1), dtype=jnp.float32)
    pe1 = create_positional_encodings(S1, D1, dtype=x1.dtype)
    out1 = jax.block_until_ready(positional_encoding_forward(x1, pe1))
    ref1 = x1 + pe1[None, :, :]
    assert out1.shape == x1.shape
    assert jnp.allclose(out1, ref1, atol=1e-6), "mismatch vs reference (seq-tiled path)"

    # Fully unaligned D (S*D % 128 != 0): bounded seq-tiled fallback with masked tail.
    B2, S2, D2 = 2, 8, 40
    x2 = jax.random.normal(jax.random.PRNGKey(0), (B2, S2, D2), dtype=jnp.float32)
    pe2 = create_positional_encodings(S2, D2, dtype=x2.dtype)
    out2 = jax.block_until_ready(positional_encoding_forward(x2, pe2))
    ref2 = x2 + pe2[None, :, :]
    assert out2.shape == x2.shape
    assert jnp.allclose(out2, ref2, atol=1e-6), "mismatch vs reference (unaligned-D path)"

    print("KERNEL_OK")
</pallas_src>

<mosaic_0001>
module attributes {stable_mosaic.version = 11 : i64} {
  func.func @_add_pe_kernel(%arg0: i32, %arg1: i32, %arg2: memref<2x256xf32, #tpu.memory_space<vmem>>, %arg3: memref<1x256xf32, #tpu.memory_space<vmem>>, %arg4: memref<2x256xf32, #tpu.memory_space<vmem>>) attributes {dimension_semantics = [#tpu.dimension_semantics<parallel>, #tpu.dimension_semantics<parallel>], iteration_bounds = array<i64: 1, 1>, scalar_prefetch = 0 : i64, scratch_operands = 0 : i64, tpu.core_type = #tpu.core_type<tc>, window_params = [{transform_indices = @transform_0, window_bounds = array<i64: 2, 256>}, {transform_indices = @transform_1, window_bounds = array<i64: 1, 256>}, {transform_indices = @transform_2, window_bounds = array<i64: 2, 256>}]} {
    %c0 = arith.constant 0 : index
    %c0_0 = arith.constant 0 : index
    %0 = vector.load %arg2[%c0, %c0_0] : memref<2x256xf32, #tpu.memory_space<vmem>>, vector<2x256xf32>
    %c0_1 = arith.constant 0 : index
    %c0_2 = arith.constant 0 : index
    %1 = vector.load %arg3[%c0_1, %c0_2] : memref<1x256xf32, #tpu.memory_space<vmem>>, vector<1x256xf32>
    %2 = vector.broadcast %1 : vector<1x256xf32> to vector<2x256xf32>
    %3 = arith.addf %0, %2 : vector<2x256xf32>
    %c0_3 = arith.constant 0 : index
    %c0_4 = arith.constant 0 : index
    %4 = vector.load %arg4[%c0_3, %c0_4] : memref<2x256xf32, #tpu.memory_space<vmem>>, vector<2x256xf32>
    tpu.vector_store %arg4[%c0_3, %c0_4], %3 {strides = array<i32>} : memref<2x256xf32, #tpu.memory_space<vmem>>, vector<2x256xf32>,
    return
  }
  func.func @transform_0(%arg0: i32, %arg1: i32) -> (i32, i32) {
    %c0_i32 = arith.constant 0 : i32
    return %arg1, %arg0 : i32, i32
  }
  func.func @transform_1(%arg0: i32, %arg1: i32) -> (i32, i32) {
    %c0_i32 = arith.constant 0 : i32
    %c0_i32_0 = arith.constant 0 : i32
    return %c0_i32, %arg0 : i32, i32
  }
  func.func @transform_2(%arg0: i32, %arg1: i32) -> (i32, i32) {
    %c0_i32 = arith.constant 0 : i32
    return %arg1, %arg0 : i32, i32
  }
}

</mosaic_0001>

<bundles_post_ra>
// kernel: tpu_custom_call.1
= control target key start
LH: loop header
LB: loop body
LE: loop exit
PB: predicated region body
PF: predicated region fallthrough
CT: control target
= control target key end

     0   :  { %7 = vsyncpa [#allocation3], 0  ;;  %s157_s0 = inlined_call_operand.hbm [shape: f32[2,256], index: 0, kind: input, shape index: {}]   ;;  %s158_s1 = inlined_call_operand.vmem [shape: f32[1,256], index: 1, kind: input, shape index: {}]   ;;  %s159_s2 = inlined_call_operand.hbm [shape: f32[2,256], index: 2, kind: output, shape index: {}]  }
   0x1   :  { %8 = vsyncpa [#allocation4], 0  ;;  %s112_s9 = smov [#allocation2]   ;;  %s64_s13 = scalar_lea.hbm %s157_s0, 64 }
   0x2   :  { %s15_s10 = sshll.u32 %s112_s9, 4  ;;  %p65_p0 = scmp.ne.s32.totalorder %s157_s0, %s64_s13  ;;  %s16_s10 = int_to_ptr.vmem [resolvable:$true] %s15_s10 }
   0x3   :  { %p68_p1 = scmp.lt.u32.totalorder %s64_s13, %s157_s0 }
   0x5   :  { %p70_p2 = pnand %p68_p1, %p65_p0 }
   0x7   :  { %73 = shalt.err (!%p70_p2)
}
   0x8   :  { %s74_s18 = scalar_lea.vmem %s16_s10, 64  ;;  %p79_p4 = scmp.lt.s32.totalorder %s16_s10, %s16_s10 }
   0x9   :  { %p75_p3 = scmp.ne.s32.totalorder %s16_s10, %s74_s18  ;;  %p80_p5 = scmp.lt.s32.totalorder %s74_s18, %s74_s18 }
   0xb   :  { %p81_p6 = por %p80_p5, %p79_p4 }
   0xd   :  { %p82_p7 = pnand %p81_p6, %p75_p3 }
   0xf   :  { %85 = shalt.err (!%p82_p7)
}
  0x10   :  { %18 = dma.hbm_to_vmem [thread:$0]  %s157_s0, 64, %s16_s10, [#allocation3]  }
  0x11   :  { %108 = dma.done.wait [#allocation3], 64  }
  0x12   :  { %109 = vsyncadd [#allocation3], 4294967232  ;;  %v27_v0 = vlaneseq  ;;  %v113_v1 = vmov 1983009808   ;;  %v25_v7 = vld [vmem:[%s158_s1] sm:$0x3] }
  0x13   :  { %v37_v2 = vunpack.c.l.s4 %v113_v1  ;;  %v24_v12 = vld [vmem:[#allocation2] sm:$0xf]  ;;  %s114_s23 = smov [#allocation5]  }
  0x14   :  { %v28_v3 = vshrl.u32 %v27_v0, 7  ;;  %s52_s0 = sshll.u32 %s114_s23, 4  ;;  %s53_s0 = int_to_ptr.vmem [resolvable:$true] %s52_s0 }
  0x15   :  { %v38_v6 = vunpack.c.0.s8 %v37_v2  ;;  %s86_s24 = scalar_lea.vmem %s53_s0, 64  ;;  %p91_p9 = scmp.lt.s32.totalorder %s53_s0, %s53_s0 }
  0x16   :  { %v29_v4 = vsub.s32 0, %v28_v3  ;;  %v33_v5 = vsub.s32 1, %v28_v3  ;;  %p87_p8 = scmp.ne.s32.totalorder %s53_s0, %s86_s24  ;;  %p92_p10 = scmp.lt.s32.totalorder %s86_s24, %s86_s24 }
  0x17   :  { %v41_v10 = vsub.s32 %v38_v6, %v28_v3 }
  0x18   :  { %v30_v8 = vrot.slane %v25_v7, %v29_v4  ;;  %v34_v9 = vrot.slane %v25_v7, %v33_v5  ;;  %p93_p11 = por %p92_p10, %p91_p9 }
  0x1a   :  { %v35_v11 = vcombine.low %v30_v8, %v34_v9  ;;  %p94_p12 = pnand %p93_p11, %p87_p8 }
  0x1c   :  { %v42_v13 = vrot.slane %v35_v11, %v41_v10 }
  0x1e   :  { %v44_v14 = vadd.f32 %v42_v13, %v24_v12 }
  0x20   :  { %45 = vst [vmem:[#allocation5] sm:$0xf] %v44_v14 }
  0x21   :  { %97 = shalt.err (!%p94_p12)
}
  0x22   :  { %s98_s26 = scalar_lea.hbm %s159_s2, 64 }
  0x23   :  { %p99_p13 = scmp.ne.s32.totalorder %s159_s2, %s98_s26  ;;  %p102_p0 = scmp.lt.u32.totalorder %s98_s26, %s159_s2 }
  0x25   :  { %p104_p1 = pnand %p102_p0, %p99_p13 }
  0x27   :  { %107 = shalt.err (!%p104_p1)
}
  0x28   :  { %55 = dma.vmem_to_hbm [thread:$0]  %s53_s0, 64, %s159_s2, [#allocation4]  }
  0x29   :  { %110 = dma.done.wait [#allocation4], 64  }
  0x2a   :  { %111 = vsyncadd [#allocation4], 4294967232 }
  0x2b   :  { %59 = vsyncpa [#allocation3], 1 }
  0x2c   :  { %60 = vsyncpa [#allocation4], 1 }

</bundles_post_ra>
